<compile_context>
chip_gen: v7x
topology: tpu7x:2x2x1
jax: 0.10.0
libtpu: 0.0.40
codegen_flags: <defaults>
</compile_context>

<pallas_src>
import functools

import numpy as np
import jax
import jax.numpy as jnp
from jax.experimental import pallas as pl
from jax.experimental.pallas import tpu as pltpu

LANE = 128


def _round_up(a, b):
    return (a + b - 1) // b * b


def _pad_to(x, shape):
    pads = [(0, t - s) for s, t in zip(x.shape, shape)]
    return jnp.pad(x, pads)


# ---------------------------------------------------------------------------
# Pass 1: per-tile MLP + masked partial energy sum
# ---------------------------------------------------------------------------
def _mlp_energy_kernel(x_ref, w1_ref, b1_ref, w2_ref, b2_ref,
                       means_ref, energy_ref, *, n_rows):
    tn, f = x_ref.shape
    out_dim = means_ref.shape[1]                       # = 2

    x = x_ref[...]                                     # [TN, F]   (F = bits)
    w1 = w1_ref[...]                                   # [F, HP]

    # Layer 1: contraction length F (=4) is tiny -> do it as F broadcast
    # multiply-adds on the VPU (statically unrolled), exact f32.
    acc = x[:, 0:1] * w1[0:1, :]
    for k in range(1, f):
        acc = acc + x[:, k:k + 1] * w1[k:k + 1, :]
    h = jnp.tanh(acc + b1_ref[...])                    # [TN, HP]

    # Layer 2: HP x OP = 128 x 128 -> aligned MXU matmul; only the first
    # `out_dim` lanes are real (padded w2/b2 columns are exactly zero, so the
    # padded lanes of means_full are exactly zero).
    means_full = (jnp.dot(h, w2_ref[...], preferred_element_type=jnp.float32)
                  + b2_ref[...])                       # [TN, OP]
    means_ref[...] = means_full[:, :out_dim]           # [TN, 2]

    # Per-tile energy partial over valid rows only (last tile may be padded).
    # Full-width vreg reduction: padded lanes contribute 0 by construction.
    row = pl.program_id(0) * tn + jax.lax.broadcasted_iota(jnp.int32, (tn, 1), 0)
    valid = row < n_rows
    energy_ref[0, 0] = jnp.sum(jnp.where(valid, means_full * means_full, 0.0))


# ---------------------------------------------------------------------------
# Pass 2: scale means tiles by the global scalar 1/norm (in place)
# ---------------------------------------------------------------------------
def _scale_kernel(scale_ref, m_ref, o_ref):
    o_ref[...] = m_ref[...] * scale_ref[0, 0]


# ---------------------------------------------------------------------------
# Parameter prep (hoisted out of the per-call path)
# ---------------------------------------------------------------------------
def prepare_params(w1, b1, w2, b2):
    """Pad weights/biases once.  w1: [bits, hidden], b1: [hidden],
    w2: [hidden, 2], b2: [2]  (layout: y = x @ W + b).
    Padded hidden/output columns are zero, so tanh inputs, the second matmul
    and the energy are unaffected."""
    f, hidden = w1.shape
    hp = _round_up(max(hidden, LANE), LANE)
    op = LANE
    w1p = _pad_to(w1.astype(jnp.float32), (f, hp))
    b1p = _pad_to(b1.astype(jnp.float32).reshape(1, -1), (1, hp))
    w2p = _pad_to(w2.astype(jnp.float32), (hp, op))
    b2p = _pad_to(b2.astype(jnp.float32).reshape(1, -1), (1, op))
    return w1p, b1p, w2p, b2p


# ---------------------------------------------------------------------------
# Forward
# ---------------------------------------------------------------------------
@functools.partial(jax.jit, static_argnames=("block_rows",))
def neural_forward(x, params, *, block_rows=1024):
    """x: [N, bits_per_symbol] float; params from prepare_params."""
    w1p, b1p, w2p, b2p = params
    n, f = x.shape
    hp = w1p.shape[1]
    op = w2p.shape[1]
    out_dim = 2

    x = x.astype(jnp.float32)

    tn = min(block_rows, _round_up(max(n, 8), 8))
    tn = _round_up(tn, 8)
    n_pad = _round_up(n, tn)
    num_tiles = n_pad // tn
    if n_pad != n:
        x = jnp.pad(x, ((0, n_pad - n), (0, 0)))

    kernel = functools.partial(_mlp_energy_kernel, n_rows=n)

    flops1 = 2 * n_pad * (f * hp + hp * op)
    bytes1 = 4 * (n_pad * f + n_pad * out_dim + f * hp + hp + hp * op + op
                  + num_tiles)

    means_pad, energy_parts = pl.pallas_call(
        kernel,
        grid=(num_tiles,),
        in_specs=[
            pl.BlockSpec((tn, f), lambda i: (i, 0)),      # x tile (no padding)
            pl.BlockSpec((f, hp), lambda i: (0, 0)),      # w1 (VMEM-resident)
            pl.BlockSpec((1, hp), lambda i: (0, 0)),      # b1
            pl.BlockSpec((hp, op), lambda i: (0, 0)),     # w2
            pl.BlockSpec((1, op), lambda i: (0, 0)),      # b2
        ],
        out_specs=(
            pl.BlockSpec((tn, out_dim), lambda i: (i, 0)),           # means
            pl.BlockSpec((1, 1), lambda i: (i, 0),                   # energy
                         memory_space=pltpu.MemorySpace.SMEM),
        ),
        out_shape=(
            jax.ShapeDtypeStruct((n_pad, out_dim), jnp.float32),
            jax.ShapeDtypeStruct((num_tiles, 1), jnp.float32),
        ),
        compiler_params=pltpu.CompilerParams(
            dimension_semantics=("parallel",),
            vmem_limit_bytes=32 * 1024 * 1024,
        ),
        cost_estimate=pl.CostEstimate(
            flops=flops1, transcendentals=n_pad * hp, bytes_accessed=bytes1),
    )(x, w1p, b1p, w2p, b2p)

    # Tiny scalar epilogue: combine per-tile partials, sqrt / relu / reciprocal.
    avg_power = jnp.sqrt(jnp.sum(energy_parts) / n)
    normalization = jnp.maximum(avg_power - 1.0, 0.0) + 1.0
    inv_norm = (1.0 / normalization).reshape(1, 1).astype(jnp.float32)

    out_pad = pl.pallas_call(
        _scale_kernel,
        grid=(num_tiles,),
        in_specs=[
            pl.BlockSpec((1, 1), lambda i: (0, 0),
                         memory_space=pltpu.MemorySpace.SMEM),       # 1/norm
            pl.BlockSpec((tn, out_dim), lambda i: (i, 0)),           # means
        ],
        out_specs=pl.BlockSpec((tn, out_dim), lambda i: (i, 0)),
        out_shape=jax.ShapeDtypeStruct((n_pad, out_dim), jnp.float32),
        # Rescale in place: means_pad (input 1) aliases the output buffer.
        input_output_aliases={1: 0},
        compiler_params=pltpu.CompilerParams(
            dimension_semantics=("parallel",),
            vmem_limit_bytes=32 * 1024 * 1024,
        ),
        cost_estimate=pl.CostEstimate(
            flops=n_pad * out_dim, transcendentals=0,
            bytes_accessed=2 * n_pad * out_dim * 4),
    )(inv_norm, means_pad)

    return out_pad[:n]


# ---------------------------------------------------------------------------
# Reference / init (mirrors the PyTorch module)
# ---------------------------------------------------------------------------
def init_params(key, bits_per_symbol, hidden):
    # Matches _init_weights: W ~ U(-1/sqrt(in), 1/sqrt(in)), b = 0.01.
    k1, k2 = jax.random.split(key)
    y1 = 1.0 / np.sqrt(bits_per_symbol)
    w1 = jax.random.uniform(k1, (bits_per_symbol, hidden), jnp.float32, -y1, y1)
    b1 = jnp.full((hidden,), 0.01, jnp.float32)
    y2 = 1.0 / np.sqrt(hidden)
    w2 = jax.random.uniform(k2, (hidden, 2), jnp.float32, -y2, y2)
    b2 = jnp.full((2,), 0.01, jnp.float32)
    return w1, b1, w2, b2


def reference_forward(x, w1, b1, w2, b2):
    # Layer 1 at HIGHEST precision to mirror PyTorch's full-f32 Linear (the
    # kernel computes this layer with exact f32 multiply-adds on the VPU).
    h = jnp.tanh(jnp.dot(x, w1, precision=jax.lax.Precision.HIGHEST) + b1)
    means = h @ w2 + b2
    avg_power = jnp.sqrt(jnp.mean(jnp.sum(means ** 2, axis=1)))
    normalization = jnp.maximum(avg_power - 1.0, 0.0) + 1.0
    return means / normalization


if __name__ == "__main__":
    bits_per_symbol = 4
    hidden = 50
    batch = 16

    key = jax.random.PRNGKey(0)
    kx, kp, kx2 = jax.random.split(key, 3)
    # Input bits in {0, 1}, shape [batch, bits_per_symbol]
    x = jax.random.bernoulli(kx, 0.5, (batch, bits_per_symbol)).astype(jnp.float32)
    w1, b1, w2, b2 = init_params(kp, bits_per_symbol, hidden)
    params = prepare_params(w1, b1, w2, b2)

    out = neural_forward(x, params, block_rows=1024)
    out = jax.block_until_ready(out)
    ref = reference_forward(x, w1, b1, w2, b2)
    np.testing.assert_allclose(np.asarray(out), np.asarray(ref),
                               rtol=1e-4, atol=1e-5)
    assert out.shape == (batch, 2)

    # Exercise the multi-tile + ragged last-tile row-masking path.
    x2 = jax.random.bernoulli(kx2, 0.5, (601, bits_per_symbol)).astype(jnp.float32)
    out2 = jax.block_until_ready(neural_forward(x2, params, block_rows=256))
    ref2 = reference_forward(x2, w1, b1, w2, b2)
    np.testing.assert_allclose(np.asarray(out2), np.asarray(ref2),
                               rtol=1e-4, atol=1e-5)

    print("KERNEL_OK")
</pallas_src>

<mosaic_0001>
module attributes {stable_mosaic.version = 11 : i64} {
  func.func @_scale_kernel(%arg0: i32, %arg1: memref<1x1xf32, #tpu.memory_space<smem>>, %arg2: memref<16x2xf32, #tpu.memory_space<vmem>>, %arg3: memref<16x2xf32, #tpu.memory_space<vmem>>) attributes {dimension_semantics = [#tpu.dimension_semantics<parallel>], iteration_bounds = array<i64: 1>, scalar_prefetch = 0 : i64, scratch_operands = 0 : i64, tpu.core_type = #tpu.core_type<tc>, window_params = [{transform_indices = @transform_0, window_bounds = array<i64: 1, 1>}, {transform_indices = @transform_1, window_bounds = array<i64: 16, 2>}, {transform_indices = @transform_2, window_bounds = array<i64: 16, 2>}]} {
    %c0 = arith.constant 0 : index
    %c0_0 = arith.constant 0 : index
    %0 = vector.load %arg2[%c0, %c0_0] : memref<16x2xf32, #tpu.memory_space<vmem>>, vector<16x2xf32>
    %c0_1 = arith.constant 0 : index
    %c0_2 = arith.constant 0 : index
    %1 = memref.load %arg1[%c0_1, %c0_2] : memref<1x1xf32, #tpu.memory_space<smem>>
    %2 = vector.broadcast %1 : f32 to vector<16x2xf32>
    %3 = arith.mulf %0, %2 : vector<16x2xf32>
    %c0_3 = arith.constant 0 : index
    %c0_4 = arith.constant 0 : index
    %4 = vector.load %arg3[%c0_3, %c0_4] : memref<16x2xf32, #tpu.memory_space<vmem>>, vector<16x2xf32>
    tpu.vector_store %arg3[%c0_3, %c0_4], %3 {strides = array<i32>} : memref<16x2xf32, #tpu.memory_space<vmem>>, vector<16x2xf32>,
    return
  }
  func.func @transform_0(%arg0: i32) -> (i32, i32) {
    %c0_i32 = arith.constant 0 : i32
    %c0_i32_0 = arith.constant 0 : i32
    %c0_i32_1 = arith.constant 0 : i32
    return %c0_i32, %c0_i32_0 : i32, i32
  }
  func.func @transform_1(%arg0: i32) -> (i32, i32) {
    %c0_i32 = arith.constant 0 : i32
    %c0_i32_0 = arith.constant 0 : i32
    return %arg0, %c0_i32 : i32, i32
  }
  func.func @transform_2(%arg0: i32) -> (i32, i32) {
    %c0_i32 = arith.constant 0 : i32
    %c0_i32_0 = arith.constant 0 : i32
    return %arg0, %c0_i32 : i32, i32
  }
}

module attributes {stable_mosaic.version = 11 : i64} {
  func.func @_mlp_energy_kernel(%arg0: i32, %arg1: memref<16x4xf32, #tpu.memory_space<vmem>>, %arg2: memref<4x128xf32, #tpu.memory_space<vmem>>, %arg3: memref<1x128xf32, #tpu.memory_space<vmem>>, %arg4: memref<128x128xf32, #tpu.memory_space<vmem>>, %arg5: memref<1x128xf32, #tpu.memory_space<vmem>>, %arg6: memref<16x2xf32, #tpu.memory_space<vmem>>, %arg7: memref<1x1xf32, #tpu.memory_space<smem>>) attributes {dimension_semantics = [#tpu.dimension_semantics<parallel>], iteration_bounds = array<i64: 1>, scalar_prefetch = 0 : i64, scratch_operands = 0 : i64, tpu.core_type = #tpu.core_type<tc>, window_params = [{transform_indices = @transform_0, window_bounds = array<i64: 16, 4>}, {pipeline_mode = #tpu.pipeline_mode<synchronous>, transform_indices = @transform_1, window_bounds = array<i64: 4, 128>}, {pipeline_mode = #tpu.pipeline_mode<synchronous>, transform_indices = @transform_2, window_bounds = array<i64: 1, 128>}, {pipeline_mode = #tpu.pipeline_mode<synchronous>, transform_indices = @transform_3, window_bounds = array<i64: 128, 128>}, {pipeline_mode = #tpu.pipeline_mode<synchronous>, transform_indices = @transform_4, window_bounds = array<i64: 1, 128>}, {transform_indices = @transform_5, window_bounds = array<i64: 16, 2>}, {transform_indices = @transform_6, window_bounds = array<i64: 1, 1>}]} {
    %c0 = arith.constant 0 : index
    %c0_0 = arith.constant 0 : index
    %0 = vector.load %arg1[%c0, %c0_0] : memref<16x4xf32, #tpu.memory_space<vmem>>, vector<16x4xf32>
    %c0_1 = arith.constant 0 : index
    %c0_2 = arith.constant 0 : index
    %1 = vector.load %arg2[%c0_1, %c0_2] : memref<4x128xf32, #tpu.memory_space<vmem>>, vector<4x128xf32>
    %2 = vector.extract_strided_slice %0 {offsets = [0, 0], sizes = [16, 1], strides = [1, 1]} : vector<16x4xf32> to vector<16x1xf32>
    %3 = vector.extract_strided_slice %1 {offsets = [0, 0], sizes = [1, 128], strides = [1, 1]} : vector<4x128xf32> to vector<1x128xf32>
    %4 = vector.broadcast %2 : vector<16x1xf32> to vector<16x128xf32>
    %5 = vector.broadcast %3 : vector<1x128xf32> to vector<16x128xf32>
    %6 = arith.mulf %4, %5 : vector<16x128xf32>
    %7 = vector.extract_strided_slice %0 {offsets = [0, 1], sizes = [16, 1], strides = [1, 1]} : vector<16x4xf32> to vector<16x1xf32>
    %8 = vector.extract_strided_slice %1 {offsets = [1, 0], sizes = [1, 128], strides = [1, 1]} : vector<4x128xf32> to vector<1x128xf32>
    %9 = vector.broadcast %7 : vector<16x1xf32> to vector<16x128xf32>
    %10 = vector.broadcast %8 : vector<1x128xf32> to vector<16x128xf32>
    %11 = arith.mulf %9, %10 : vector<16x128xf32>
    %12 = arith.addf %6, %11 : vector<16x128xf32>
    %13 = vector.extract_strided_slice %0 {offsets = [0, 2], sizes = [16, 1], strides = [1, 1]} : vector<16x4xf32> to vector<16x1xf32>
    %14 = vector.extract_strided_slice %1 {offsets = [2, 0], sizes = [1, 128], strides = [1, 1]} : vector<4x128xf32> to vector<1x128xf32>
    %15 = vector.broadcast %13 : vector<16x1xf32> to vector<16x128xf32>
    %16 = vector.broadcast %14 : vector<1x128xf32> to vector<16x128xf32>
    %17 = arith.mulf %15, %16 : vector<16x128xf32>
    %18 = arith.addf %12, %17 : vector<16x128xf32>
    %19 = vector.extract_strided_slice %0 {offsets = [0, 3], sizes = [16, 1], strides = [1, 1]} : vector<16x4xf32> to vector<16x1xf32>
    %20 = vector.extract_strided_slice %1 {offsets = [3, 0], sizes = [1, 128], strides = [1, 1]} : vector<4x128xf32> to vector<1x128xf32>
    %21 = vector.broadcast %19 : vector<16x1xf32> to vector<16x128xf32>
    %22 = vector.broadcast %20 : vector<1x128xf32> to vector<16x128xf32>
    %23 = arith.mulf %21, %22 : vector<16x128xf32>
    %24 = arith.addf %18, %23 : vector<16x128xf32>
    %c0_3 = arith.constant 0 : index
    %c0_4 = arith.constant 0 : index
    %25 = vector.load %arg3[%c0_3, %c0_4] : memref<1x128xf32, #tpu.memory_space<vmem>>, vector<1x128xf32>
    %26 = vector.broadcast %25 : vector<1x128xf32> to vector<16x128xf32>
    %27 = arith.addf %24, %26 : vector<16x128xf32>
    %28 = math.tanh %27 : vector<16x128xf32>
    %c0_5 = arith.constant 0 : index
    %c0_6 = arith.constant 0 : index
    %29 = vector.load %arg4[%c0_5, %c0_6] : memref<128x128xf32, #tpu.memory_space<vmem>>, vector<128x128xf32>
    %cst = arith.constant dense<0.000000e+00> : vector<16x128xf32>
    %30 = tpu.matmul %28, %29, %cst {dimension_numbers = #tpu.dot_dimension_numbers<[1], [0], [0], [1], [0, 0, 1, 1], [], []>} : vector<16x128xf32>, vector<128x128xf32>, vector<16x128xf32> -> vector<16x128xf32>
    %c0_7 = arith.constant 0 : index
    %c0_8 = arith.constant 0 : index
    %31 = vector.load %arg5[%c0_7, %c0_8] : memref<1x128xf32, #tpu.memory_space<vmem>>, vector<1x128xf32>
    %32 = vector.broadcast %31 : vector<1x128xf32> to vector<16x128xf32>
    %33 = arith.addf %30, %32 : vector<16x128xf32>
    %34 = vector.extract_strided_slice %33 {offsets = [0, 0], sizes = [16, 2], strides = [1, 1]} : vector<16x128xf32> to vector<16x2xf32>
    %c0_9 = arith.constant 0 : index
    %c0_10 = arith.constant 0 : index
    %35 = vector.load %arg6[%c0_9, %c0_10] : memref<16x2xf32, #tpu.memory_space<vmem>>, vector<16x2xf32>
    tpu.vector_store %arg6[%c0_9, %c0_10], %34 {strides = array<i32>} : memref<16x2xf32, #tpu.memory_space<vmem>>, vector<16x2xf32>,
    %c16_i32 = arith.constant 16 : i32
    %36 = arith.muli %arg0, %c16_i32 : i32
    %37 = tpu.iota {dimensions = array<i32: 0>} : vector<16x1xi32>
    %38 = vector.broadcast %36 : i32 to vector<16x1xi32>
    %39 = arith.addi %38, %37 : vector<16x1xi32>
    %c16_i32_11 = arith.constant 16 : i32
    %40 = vector.broadcast %c16_i32_11 : i32 to vector<16x1xi32>
    %41 = arith.cmpi slt, %39, %40 : vector<16x1xi32>
    %42 = arith.mulf %33, %33 : vector<16x128xf32>
    %cst_12 = arith.constant 0.000000e+00 : f32
    %43 = vector.shape_cast %41 : vector<16x1xi1> to vector<16x1xi1>
    %44 = vector.broadcast %43 : vector<16x1xi1> to vector<16x128xi1>
    %45 = vector.broadcast %cst_12 : f32 to vector<16x128xf32>
    %46 = arith.select %44, %42, %45 : vector<16x128xi1>, vector<16x128xf32>
    %47 = vector.shape_cast %46 : vector<16x128xf32> to vector<1x16x128xf32>
    %cst_13 = arith.constant dense<0.000000e+00> : vector<1xf32>
    %48 = vector.multi_reduction <add>, %47, %cst_13 [1, 2] : vector<1x16x128xf32> to vector<1xf32>
    %49 = vector.shape_cast %48 : vector<1xf32> to vector<1x1x1xf32>
    %50 = vector.extract %49[0, 0, 0] : f32 from vector<1x1x1xf32>
    %c0_14 = arith.constant 0 : index
    %c0_15 = arith.constant 0 : index
    %51 = memref.load %arg7[%c0_14, %c0_15] : memref<1x1xf32, #tpu.memory_space<smem>>
    memref.store %50, %arg7[%c0_14, %c0_15] : memref<1x1xf32, #tpu.memory_space<smem>>
    return
  }
  func.func @transform_0(%arg0: i32) -> (i32, i32) {
    %c0_i32 = arith.constant 0 : i32
    %c0_i32_0 = arith.constant 0 : i32
    return %arg0, %c0_i32 : i32, i32
  }
  func.func @transform_1(%arg0: i32) -> (i32, i32) {
    %c0_i32 = arith.constant 0 : i32
    %c0_i32_0 = arith.constant 0 : i32
    %c0_i32_1 = arith.constant 0 : i32
    return %c0_i32, %c0_i32_0 : i32, i32
  }
  func.func @transform_2(%arg0: i32) -> (i32, i32) {
    %c0_i32 = arith.constant 0 : i32
    %c0_i32_0 = arith.constant 0 : i32
    %c0_i32_1 = arith.constant 0 : i32
    return %c0_i32, %c0_i32_0 : i32, i32
  }
  func.func @transform_3(%arg0: i32) -> (i32, i32) {
    %c0_i32 = arith.constant 0 : i32
    %c0_i32_0 = arith.constant 0 : i32
    %c0_i32_1 = arith.constant 0 : i32
    return %c0_i32, %c0_i32_0 : i32, i32
  }
  func.func @transform_4(%arg0: i32) -> (i32, i32) {
    %c0_i32 = arith.constant 0 : i32
    %c0_i32_0 = arith.constant 0 : i32
    %c0_i32_1 = arith.constant 0 : i32
    return %c0_i32, %c0_i32_0 : i32, i32
  }
  func.func @transform_5(%arg0: i32) -> (i32, i32) {
    %c0_i32 = arith.constant 0 : i32
    %c0_i32_0 = arith.constant 0 : i32
    return %arg0, %c0_i32 : i32, i32
  }
  func.func @transform_6(%arg0: i32) -> (i32, i32) {
    %c0_i32 = arith.constant 0 : i32
    %c0_i32_0 = arith.constant 0 : i32
    return %arg0, %c0_i32 : i32, i32
  }
}

</mosaic_0001>

<bundles_post_ra>
// kernel: neural_forward.3
= control target key start
LH: loop header
LB: loop body
LE: loop exit
PB: predicated region body
PF: predicated region fallthrough
CT: control target
= control target key end

     0   :  { %vm18_vm0 = vcmask 15360   ;;  %s55_s0 = inlined_call_operand.<no memory space> [shape: f32[1,1], index: 0, kind: input, shape index: {}]   ;;  %s56_s1 = inlined_call_operand.vmem [shape: f32[16,2], index: 1, kind: input, shape index: {}, may-alias: {1,2}]   ;;  %s57_s2 = inlined_call_operand.vmem [shape: f32[16,2], index: 2, kind: output, shape index: {}, may-alias: {1,2}]  }
   0x1   :  { %v12_v0 = vld [vmem:[%s56_s1] sm:$0xff]  ;;  %v15_v1 = vstv %s55_s0  ;;  %v13_v2 = vld [vmem:[%s56_s1 + $0x8] sm:$0xff] }
   0x2   :  { %v16_v3 = vmul.f32 %v15_v1, %v12_v0  ;;  %v17_v4 = vmul.f32 %v15_v1, %v13_v2 }
   0x4   :  { %19 = vst.msk [vmem:[%s57_s2] sm:$0xff] %vm18_vm0, %v16_v3  ;;  %20 = vst.msk [vmem:[%s57_s2 + $0x8] sm:$0xff] %vm18_vm0, %v17_v4 }

// kernel: neural_forward.2
= control target key start
LH: loop header
LB: loop body
LE: loop exit
PB: predicated region body
PF: predicated region fallthrough
CT: control target
= control target key end

     0   :  { %12 = vsyncpa [#allocation3], 0  ;;  %s496_s0 = inlined_call_operand.vmem [shape: f32[16,4], index: 0, kind: input, shape index: {}]   ;;  %s497_s1 = inlined_call_operand.vmem [shape: f32[4,128], index: 1, kind: input, shape index: {}]   ;;  %s498_s2 = inlined_call_operand.vmem [shape: f32[1,128], index: 2, kind: input, shape index: {}]   ;;  %s499_s3 = inlined_call_operand.hbm [shape: f32[128,128], index: 3, kind: input, shape index: {}]   ;;  %s500_s4 = inlined_call_operand.vmem [shape: f32[1,128], index: 4, kind: input, shape index: {}]   ;;  %s501_s5 = inlined_call_operand.vmem [shape: f32[16,2], index: 5, kind: output, shape index: {0}]   ;;  %s502_s6 = inlined_call_operand.hbm [shape: f32[1,1], index: 6, kind: output, shape index: {1}]  }
   0x1   :  { %13 = vsyncpa [#allocation4], 0  ;;  %s408_s21 = smov [#allocation2]   ;;  %s372_s25 = scalar_lea.hbm %s499_s3, 2048 }
   0x2   :  { %s25_s22 = sshll.u32 %s408_s21, 4  ;;  %p373_p0 = scmp.ne.s32.totalorder %s499_s3, %s372_s25  ;;  %s26_s22 = int_to_ptr.vmem [resolvable:$true] %s25_s22 }
   0x3   :  { %p376_p1 = scmp.lt.u32.totalorder %s372_s25, %s499_s3 }
   0x5   :  { %p378_p2 = pnand %p376_p1, %p373_p0 }
   0x7   :  { %381 = shalt.err (!%p378_p2)
}
   0x8   :  { %s382_s30 = scalar_lea.vmem %s26_s22, 2048  ;;  %p387_p4 = scmp.lt.s32.totalorder %s26_s22, %s26_s22 }
   0x9   :  { %p383_p3 = scmp.ne.s32.totalorder %s26_s22, %s382_s30  ;;  %p388_p5 = scmp.lt.s32.totalorder %s382_s30, %s382_s30 }
   0xb   :  { %p389_p6 = por %p388_p5, %p387_p4 }
   0xd   :  { %p390_p7 = pnand %p389_p6, %p383_p3 }
   0xf   :  { %393 = shalt.err (!%p390_p7)
}
  0x10   :  { %s409_s7 = smov 128   ;;  %s410_s8 = smov 8  }
  0x11   :  { %31 = dma.hbm_to_vmem [thread:$0]  %s499_s3, 2048, %s26_s22, [#allocation3], %s409_s7, %s409_s7, %s410_s8  }
  0x12   :  { %404 = dma.done.wait [#allocation3], 2048  }
  0x13   :  { %405 = vsyncadd [#allocation3], 4294965248  ;;  %v411_v0 = vmov 0   ;;  %v38_v1 = vld [vmem:[%s496_s0 + $0x8] sm:$0xff]  ;;  %v37_v2 = vld [vmem:[%s496_s0] sm:$0xff]  ;;  %v412_v6 = vmov 1   ;;  %v50_v30 = vlaneseq }
  0x14   :  { %362 = vset.pattern.permute.xlu1 %v411_v0  ;;  %360 = vset.pattern.permute.xlu0 %v411_v0  ;;  %v115_v3 = vld [vmem:[#allocation2] sm:$0xff]  ;;  %v116_v4 = vld [vmem:[#allocation2 + $0x8] sm:$0xff]  ;;  %v117_v7 = vld [vmem:[#allocation2 + $0x10] sm:$0xff]  ;;  %v413_v10 = vmov 2   ;;  %v414_v16 = vmov 3   ;;  %vm213_vm0 = vcmask 15360  }
  0x15   :  { %47 = vperm.xlu1 %362, %v38_v1   ;;  %42 = vperm.xlu0 %360, %v37_v2   ;;  %v318_v5 = vpack.c.bf16 %v116_v4, %v115_v3  ;;  %v118_v8 = vld [vmem:[#allocation2 + $0x18] sm:$0xff]  ;;  %v119_v11 = vld [vmem:[#allocation2 + $0x20] sm:$0xff]  ;;  %v120_v12 = vld [vmem:[#allocation2 + $0x28] sm:$0xff]  ;;  %v51_v31 = vshrl.u32 %v50_v30, 7  ;;  %s394_s23 = scalar_lea.hbm %s502_s6, 16 }
  0x16   :  { %v322_v9 = vpack.c.bf16 %v118_v8, %v117_v7  ;;  %v326_v13 = vpack.c.bf16 %v120_v12, %v119_v11  ;;  %v121_v14 = vld [vmem:[#allocation2 + $0x30] sm:$0xff]  ;;  %v122_v15 = vld [vmem:[#allocation2 + $0x38] sm:$0xff]  ;;  %v123_v18 = vld [vmem:[#allocation2 + $0x40] sm:$0xff]  ;;  %p395_p8 = scmp.ne.s32.totalorder %s502_s6, %s394_s23  ;;  %p398_p9 = scmp.lt.u32.totalorder %s394_s23, %s502_s6 }
  0x17   :  { %319 = vmatprep.subr.bf16.mxu0 %v318_v5  ;;  %v330_v17 = vpack.c.bf16 %v122_v15, %v121_v14  ;;  %v124_v19 = vld [vmem:[#allocation2 + $0x48] sm:$0xff]  ;;  %v125_v21 = vld [vmem:[#allocation2 + $0x50] sm:$0xff]  ;;  %v126_v22 = vld [vmem:[#allocation2 + $0x58] sm:$0xff]  ;;  %v52_v34 = vsub.s32 0, %v51_v31  ;;  %v66_v35 = vsub.s32 1, %v51_v31  ;;  %v82_v37 = vsub.s32 2, %v51_v31 }
  0x18   :  { %321 = vmatpush3.bf16.msra.mxu0 %v318_v5  ;;  %v334_v20 = vpack.c.bf16 %v124_v19, %v123_v18  ;;  %v127_v23 = vld [vmem:[#allocation2 + $0x60] sm:$0xff]  ;;  %v338_v24 = vpack.c.bf16 %v126_v22, %v125_v21  ;;  %v128_v25 = vld [vmem:[#allocation2 + $0x68] sm:$0xff]  ;;  %v129_v27 = vld [vmem:[#allocation2 + $0x70] sm:$0xff]  ;;  %v98_v45 = vsub.s32 3, %v51_v31  ;;  %p400_p10 = pnand %p398_p9, %p395_p8 }
  0x19   :  { %363 = vset.pattern.permute.xlu1 %v412_v6  ;;  %361 = vset.pattern.permute.xlu0 %v412_v6  ;;  %v342_v26 = vpack.c.bf16 %v128_v25, %v127_v23  ;;  %v130_v28 = vld [vmem:[#allocation2 + $0x78] sm:$0xff]  ;;  %v39_v36 = vld [vmem:[%s497_s1] sm:$0xf] }
  0x1a   :  { %61 = vperm.xlu1 %363, %v38_v1   ;;  %57 = vperm.xlu0 %361, %v37_v2   ;;  %v346_v29 = vpack.c.bf16 %v130_v28, %v129_v27  ;;  %v53_v40 = vrot.slane %v39_v36, %v52_v34  ;;  %v67_v41 = vrot.slane %v39_v36, %v66_v35  ;;  %v263_v57 = vld [vmem:[%s498_s2] ss:$0 sm:$0xff] }
  0x1b   :  { %323 = vmatprep.subr.bf16.mxu0 %v322_v9  ;;  %v83_v44 = vrot.slane %v39_v36, %v82_v37  ;;  %v99_v49 = vrot.slane %v39_v36, %v98_v45  ;;  %v264_v4 = vld [vmem:[%s500_s4] ss:$0 sm:$0xff] }
  0x1c   :  { %325 = vmatpush3.bf16.msra.mxu0 %v322_v9 }
  0x1d   :  { %327 = vmatprep.subr.bf16.mxu0 %v326_v13 }
  0x1e   :  { %364 = vset.pattern.permute.xlu1 %v413_v10  ;;  %365 = vset.pattern.permute.xlu0 %v413_v10 }
  0x1f   :  { %73 = vperm.xlu1 %364, %v37_v2   ;;  %77 = vperm.xlu0 %365, %v38_v1  }
  0x20   :  { %329 = vmatpush3.bf16.msra.mxu0 %v326_v13 }
  0x21   :  { %331 = vmatprep.subr.bf16.mxu0 %v330_v17 }
  0x23   :  { %366 = vset.pattern.permute.xlu1 %v414_v16  ;;  %367 = vset.pattern.permute.xlu0 %v414_v16 }
  0x24   :  { %89 = vperm.xlu1 %366, %v37_v2   ;;  %333 = vmatpush3.bf16.msra.mxu0 %v330_v17 }
  0x25   :  { %335 = vmatprep.subr.bf16.mxu0 %v334_v20 }
  0x28   :  { %93 = vperm.xlu1 %366, %v38_v1   ;;  %337 = vmatpush3.bf16.msra.mxu0 %v334_v20 }
  0x29   :  { %339 = vmatprep.subr.bf16.mxu0 %v338_v24 }
  0x2c   :  { %341 = vmatpush3.bf16.msra.mxu0 %v338_v24 }
  0x2d   :  { %343 = vmatprep.subr.bf16.mxu0 %v342_v26 }
  0x30   :  { %345 = vmatpush3.bf16.msra.mxu0 %v342_v26 }
  0x31   :  { %347 = vmatprep.subr.bf16.mxu0 %v346_v29 }
  0x34   :  { %349 = vmatpush3.bf16.msra.mxu0 %v346_v29 }
  0x94   :  { %v48_v32 = vpop.permute.xlu1 %47  ;;  %v43_v33 = vpop.permute.xlu0 %42 }
  0x95   :  { %v54_v42 = vmul.f32 %v53_v40, %v43_v33  ;;  %v55_v53 = vmul.f32 %v53_v40, %v48_v32 }
  0x99   :  { %v62_v38 = vpop.permute.xlu1 %61  ;;  %v58_v39 = vpop.permute.xlu0 %57 }
  0x9a   :  { %v68_v43 = vmul.f32 %v67_v41, %v58_v39  ;;  %v69_v51 = vmul.f32 %v67_v41, %v62_v38 }
  0x9c   :  { %v70_v47 = vadd.f32 %v68_v43, %v54_v42  ;;  %v71_v58 = vadd.f32 %v69_v51, %v55_v53 }
  0x9e   :  { %v74_v46 = vpop.permute.xlu1 %73  ;;  %v78_v50 = vpop.permute.xlu0 %77 }
  0x9f   :  { %v84_v48 = vmul.f32 %v83_v44, %v74_v46  ;;  %v85_v55 = vmul.f32 %v83_v44, %v78_v50 }
  0xa1   :  { %v86_v54 = vadd.f32 %v84_v48, %v70_v47  ;;  %v87_v61 = vadd.f32 %v85_v55, %v71_v58 }
  0xa3   :  { %v90_v52 = vpop.permute.xlu1 %89 }
  0xa4   :  { %v100_v56 = vmul.f32 %v99_v49, %v90_v52 }
  0xa6   :  { %v102_v59 = vadd.f32 %v100_v56, %v86_v54 }
  0xa7   :  { %v94_v60 = vpop.permute.xlu1 %93 }
  0xa8   :  { %v101_v62 = vmul.f32 %v99_v49, %v94_v60  ;;  %v111_v63 = vadd.f32 %v263_v57, %v102_v59 }
  0xaa   :  { %v103_v0 = vadd.f32 %v101_v62, %v87_v61  ;;  %368 = vtanh.f32 %v111_v63 }
  0xac   :  { %v112_v1 = vadd.f32 %v263_v57, %v103_v0 }
  0xae   :  { %370 = vtanh.f32 %v112_v1 }
  0xb4   :  { %v369_v2 = vpop.eup %368 }
  0xb5   :  { %315 = vmatprep.mubr.f32.mxu0 %v369_v2 }
  0xb8   :  { %v371_v3 = vpop.eup %370 }
  0xb9   :  { %316 = vmatmul.mubr.f32.vlgmr.msra.gmra.mrb[0].mxu0 %v371_v3 }
 0x18c   :  { %v317_v5 = vpop.f32.mrb[0].mxu0 }
 0x18d   :  { %v210_v6 = vadd.f32 %v317_v5, %v264_v4  ;;  %v204_v7 = vpop.f32.mrb[1].mxu0 }
 0x18e   :  { %v205_v8 = vadd.f32 %v264_v4, %v204_v7 }
 0x18f   :  { %215 = vst.msk [vmem:[%s501_s5 + $0x8] sm:$0xff] %vm213_vm0, %v210_v6  ;;  %v226_v9 = vmul.f32 %v210_v6, %v210_v6 }
 0x190   :  { %214 = vst.msk [vmem:[%s501_s5] sm:$0xff] %vm213_vm0, %v205_v8  ;;  %v225_v10 = vmul.f32 %v205_v8, %v205_v8 }
 0x192   :  { %v233_v11 = vadd.f32 %v226_v9, %v225_v10 }
 0x194   :  { %234 = vadd.xlane.f32.xlu0 %v233_v11 }
 0x221   :  { %v235_v12 = vpop.xlane.xlu0 %234 }
 0x222   :  { %v236_v13 = vrot.slane %v235_v12, 4 }
 0x224   :  { %v237_v14 = vadd.f32 %v236_v13, %v235_v12 }
 0x226   :  { %v238_v15 = vrot.slane %v237_v14, 2 }
 0x228   :  { %v239_v16 = vadd.f32 %v238_v15, %v237_v14 }
 0x22a   :  { %v240_v17 = vrot.slane %v239_v16, 1 }
 0x22c   :  { %v241_v18 = vadd.f32 %v240_v17, %v239_v16 }
 0x22e   :  { %350 = vpush %v241_v18 }
 0x25f   :  { %s351_s4 = spop %350 }
 0x260   :  { %244 = sst [smem:[#allocation5]] %s351_s4 }
 0x261   :  { %403 = shalt.err (!%p400_p10)
}
 0x262   :  { %s415_s27 = smov [#allocation5]  }
 0x263   :  { %254 = dma.smem_to_hbm %s415_s27, 16, %s502_s6, [#allocation4]  }
 0x264   :  { %406 = dma.done.wait [#allocation4], 16  }
 0x265   :  { %407 = vsyncadd [#allocation4], 4294967280 }
 0x266   :  { %260 = sfence }
 0x267   :  { %261 = vsyncpa [#allocation3], 1 }
 0x268   :  { %262 = vsyncpa [#allocation4], 1 }

</bundles_post_ra>
